<compile_context>
chip_gen: v5e
topology: v5e:2x2
jax: 0.10.0
libtpu: 0.0.40
codegen_flags: <defaults>
</compile_context>

<pallas_src>
import functools

import jax
import jax.numpy as jnp
from jax import lax
from jax.experimental import pallas as pl
from jax.experimental.pallas import tpu as pltpu


# ----------------------------- compiler params ---------------------------------

@functools.lru_cache(maxsize=None)
def _vmem_limit_bytes():
    """Per-generation VMEM budget (~75% of capacity, never above 64 MiB)."""
    try:
        cap = int(pltpu.get_tpu_info().vmem_capacity_bytes)
    except Exception:
        cap = 64 * 1024 * 1024
    return max(32 * 1024 * 1024, min((cap * 3) // 4, 64 * 1024 * 1024))


def _cparams(dimension_semantics=None):
    return pltpu.CompilerParams(dimension_semantics=dimension_semantics,
                                vmem_limit_bytes=_vmem_limit_bytes())


# ------------------------------- Pallas kernels ---------------------------------

def _linear_kernel(x_ref, w_ref, b_ref, o_ref):
    # x: (B, K) f32, w: (K, N) bf16 (pre-transposed), b: (1, N) f32.
    o_ref[...] = jnp.dot(x_ref[...].astype(jnp.bfloat16), w_ref[...],
                         preferred_element_type=jnp.float32) + b_ref[...]


def _stats_kernel(x_ref, s_ref, q_ref):
    # x block: (1, C, M).  Accumulate per-channel sum / sum-of-squares over the
    # batch grid axis into resident (C, 1) accumulator outputs.
    @pl.when(pl.program_id(0) == 0)
    def _init():
        s_ref[...] = jnp.zeros_like(s_ref)
        q_ref[...] = jnp.zeros_like(q_ref)

    x = x_ref[0]
    s_ref[...] += jnp.sum(x, axis=1, keepdims=True)
    q_ref[...] += jnp.sum(x * x, axis=1, keepdims=True)


def _make_conv1x1_kernel(cin):
    small = cin <= 4

    def kernel(x_ref, w_ref, b_ref, o_ref):
        x = x_ref[0]                                     # (Cin, TM) f32
        if small:
            acc = w_ref[:, 0:1] * x[0:1, :]
            for c in range(1, cin):
                acc = acc + w_ref[:, c:c + 1] * x[c:c + 1, :]
        else:
            acc = jnp.dot(w_ref[...], x, preferred_element_type=jnp.float32)
        o_ref[0] = acc + b_ref[...]

    return kernel


def _make_conv3x3_kernel(width, cin, use_bn, use_sc, activation):
    """[BN+ReLU] -> conv3x3(pad=1) -> [+shortcut] -> [tanh].

    Input is a zero-padded, row-major flattened (H+2, W+2) grid ("GL" layout,
    plus 2 trailing slack lanes).  Output is row-major over an (H, W+2) grid
    ("OL" layout; the last 2 columns of each row are junk, sliced by the
    wrapper).  Each of the 9 taps is a static lane-offset slice, so no 9x
    im2col tensor is ever materialized in HBM.
    """
    rowlen = width + 2
    use_mxu = cin > 4

    def kernel(*refs):
        it = iter(refs)
        x_ref = next(it)
        w_ref = next(it)
        b_ref = next(it)
        scale_ref = shift_ref = mask_ref = sc_ref = None
        if use_bn:
            scale_ref, shift_ref, mask_ref = next(it), next(it), next(it)
        if use_sc:
            sc_ref = next(it)
        o_ref = next(it)

        mo = o_ref.shape[2]
        x = x_ref[0]                                      # (Cin, Lg) f32
        if use_bn:
            # batch-stats BN + ReLU; mask re-zeroes the conv's zero-padding ring.
            x = jnp.maximum(x * scale_ref[...] + shift_ref[...], 0.0) * mask_ref[...]
        a16 = x.astype(jnp.bfloat16)                      # bf16 operands, f32 acc

        acc = None
        if use_mxu:
            for t in range(9):
                off = (t // 3) * rowlen + (t % 3)
                part = jnp.dot(w_ref[t], a16[:, off:off + mo],
                               preferred_element_type=jnp.float32)
                acc = part if acc is None else acc + part
        else:
            # Narrow channels: 9 shifted VPU multiply-accumulates on the same
            # bf16-rounded values (kept in f32 arithmetic), skipping the MXU.
            af = a16.astype(jnp.float32)
            wf = w_ref[...].astype(jnp.float32)           # (9, Cout, Cin)
            for t in range(9):
                off = (t // 3) * rowlen + (t % 3)
                a_t = af[:, off:off + mo]
                for c in range(cin):
                    part = wf[t, :, c:c + 1] * a_t[c:c + 1, :]
                    acc = part if acc is None else acc + part

        acc = acc + b_ref[...]
        if use_sc:
            acc = acc + sc_ref[0]
        if activation == "tanh":
            acc = jnp.tanh(acc)
        o_ref[0] = acc

    return kernel


# ------------------------------- layout glue ------------------------------------

def _to_gl(x_nchw):
    """NCHW -> (N, C, Lg): zero-pad spatial by 1, flatten rows, +2 slack lanes."""
    n, c, h, w = x_nchw.shape
    xp = jnp.pad(x_nchw, ((0, 0), (0, 0), (1, 1), (1, 1)))
    return jnp.pad(xp.reshape(n, c, (h + 2) * (w + 2)), ((0, 0), (0, 0), (0, 2)))


def _gl_mask(h, w):
    """(1, Lg) 1.0-inside / 0.0-on-padding mask (constant-folded by XLA)."""
    m = jnp.pad(jnp.ones((h, w), jnp.float32), ((1, 1), (1, 1)))
    return jnp.pad(m.reshape(1, (h + 2) * (w + 2)), ((0, 0), (0, 2)))


def _from_ol(y, h, w):
    """(N, C, H*(W+2)) conv output -> NCHW, dropping the 2 junk columns."""
    n, c, _ = y.shape
    return y.reshape(n, c, h, w + 2)[:, :, :, :w]


def _to_ol(x_nchw):
    """NCHW -> (N, C, H*(W+2)) so a shortcut matches the conv output layout."""
    n, c, h, w = x_nchw.shape
    return jnp.pad(x_nchw, ((0, 0), (0, 0), (0, 0), (0, 2))).reshape(n, c, h * (w + 2))


def conv_w_to_taps(w_oihw):
    """PyTorch OIHW (O, I, 3, 3) -> (9, O, I) bf16, tap index t = 3*dh + dw."""
    o, i = w_oihw.shape[0], w_oihw.shape[1]
    return jnp.transpose(w_oihw, (2, 3, 0, 1)).reshape(9, o, i).astype(jnp.bfloat16)


def upsample2x_bilinear(x):
    """F.interpolate(scale_factor=2, mode='bilinear', align_corners=False), NCHW,
    as a gather-free fixed 2-tap blend (0.75/0.25 interior, clamp at edges)."""
    def up_axis(a, axis):
        n = a.shape[axis]
        lo = jnp.concatenate([lax.slice_in_dim(a, 0, 1, axis=axis),
                              lax.slice_in_dim(a, 0, n - 1, axis=axis)], axis=axis)
        hi = jnp.concatenate([lax.slice_in_dim(a, 1, n, axis=axis),
                              lax.slice_in_dim(a, n - 1, n, axis=axis)], axis=axis)
        even = 0.75 * a + 0.25 * lo            # out[2i]   = .75 a[i] + .25 a[i-1]
        odd = 0.75 * a + 0.25 * hi             # out[2i+1] = .75 a[i] + .25 a[i+1]
        out = jnp.stack([even, odd], axis=axis + 1)
        new_shape = list(a.shape)
        new_shape[axis] = 2 * n
        return out.reshape(new_shape)
    return up_axis(up_axis(x, 2), 3)


# ------------------------------- Pallas wrappers --------------------------------

def linear(x, w_t, b):
    """nn.Linear with a pre-transposed (in, out) bf16 weight (hoisted once)."""
    bsz, out_f = x.shape[0], w_t.shape[1]
    return pl.pallas_call(
        _linear_kernel,
        out_shape=jax.ShapeDtypeStruct((bsz, out_f), jnp.float32),
        compiler_params=_cparams(),
    )(x, w_t, b.reshape(1, out_f))


def channel_stats(x_nchw):
    """Per-channel (sum, sum of squares) over N, H, W.  Returns two (C, 1) arrays."""
    n, c, h, w = x_nchw.shape
    m = h * w
    return pl.pallas_call(
        _stats_kernel,
        grid=(n,),
        in_specs=[pl.BlockSpec((1, c, m), lambda i: (i, 0, 0))],
        out_specs=[pl.BlockSpec((c, 1), lambda i: (0, 0)),
                   pl.BlockSpec((c, 1), lambda i: (0, 0))],
        out_shape=[jax.ShapeDtypeStruct((c, 1), jnp.float32),
                   jax.ShapeDtypeStruct((c, 1), jnp.float32)],
        compiler_params=_cparams(("arbitrary",)),
    )(x_nchw.reshape(n, c, m))


def bn_affine(x_nchw, gamma, beta, eps=1e-5):
    """Batch-statistics BatchNorm folded into per-channel scale/shift (f32)."""
    n, c, h, w = x_nchw.shape
    s, q = channel_stats(x_nchw)
    cnt = float(n * h * w)
    mean = s[:, 0] / cnt
    var = jnp.maximum(q[:, 0] / cnt - mean * mean, 0.0)
    scale = gamma * lax.rsqrt(var + eps)
    shift = beta - mean * scale
    return scale, shift


def conv2d_1x1(x_nchw, w, b):
    """1x1 conv; spatial flattened on the lane axis and tiled over the grid."""
    n, cin, h, w_sp = x_nchw.shape
    cout = w.shape[0]
    m = h * w_sp
    tm = 4096 if (m > 4096 and m % 4096 == 0) else m
    out = pl.pallas_call(
        _make_conv1x1_kernel(cin),
        grid=(n, m // tm),
        in_specs=[pl.BlockSpec((1, cin, tm), lambda i, j: (i, 0, j)),
                  pl.BlockSpec((cout, cin), lambda i, j: (0, 0)),
                  pl.BlockSpec((cout, 1), lambda i, j: (0, 0))],
        out_specs=pl.BlockSpec((1, cout, tm), lambda i, j: (i, 0, j)),
        out_shape=jax.ShapeDtypeStruct((n, cout, m), jnp.float32),
        compiler_params=_cparams(("parallel", "parallel")),
    )(x_nchw.reshape(n, cin, m), w, b.reshape(cout, 1))
    return out.reshape(n, cout, h, w_sp)


def fused_conv3x3(x_nchw, w_taps, b, *, bn_scale=None, bn_shift=None,
                  shortcut=None, activation=None):
    """[BN(batch stats)+ReLU] -> conv3x3(pad=1) -> [+shortcut] -> [tanh]."""
    n, cin, h, w = x_nchw.shape
    cout = w_taps.shape[1]
    lg = (h + 2) * (w + 2) + 2
    mo = h * (w + 2)
    use_bn = bn_scale is not None
    use_sc = shortcut is not None

    args = [_to_gl(x_nchw), w_taps, b.reshape(cout, 1)]
    in_specs = [pl.BlockSpec((1, cin, lg), lambda i: (i, 0, 0)),
                pl.BlockSpec((9, cout, cin), lambda i: (0, 0, 0)),
                pl.BlockSpec((cout, 1), lambda i: (0, 0))]
    if use_bn:
        args += [bn_scale.reshape(cin, 1), bn_shift.reshape(cin, 1), _gl_mask(h, w)]
        in_specs += [pl.BlockSpec((cin, 1), lambda i: (0, 0)),
                     pl.BlockSpec((cin, 1), lambda i: (0, 0)),
                     pl.BlockSpec((1, lg), lambda i: (0, 0))]
    if use_sc:
        args += [_to_ol(shortcut)]
        in_specs += [pl.BlockSpec((1, cout, mo), lambda i: (i, 0, 0))]

    out = pl.pallas_call(
        _make_conv3x3_kernel(w, cin, use_bn, use_sc, activation),
        grid=(n,),
        in_specs=in_specs,
        out_specs=pl.BlockSpec((1, cout, mo), lambda i: (i, 0, 0)),
        out_shape=jax.ShapeDtypeStruct((n, cout, mo), jnp.float32),
        compiler_params=_cparams(("parallel",)),
    )(*args)
    return _from_ol(out, h, w)


# ------------------------------- model -------------------------------------------

def gblock_forward(p, x):
    """torch-mimicry GBlock (upsample=True, hidden_channels=out_channels)."""
    # BN1 batch statistics (Pallas reduction) -> per-channel affine.
    s1, t1 = bn_affine(x, p["b1_g"], p["b1_b"])
    # Main path.  BN1+ReLU is fused into the (single XLA pass) upsample because
    # ReLU must precede the bilinear blend; conv1/conv2 run as fused Pallas
    # kernels (conv2 carries the BN2+ReLU prologue and the residual-add epilogue).
    a = jnp.maximum(x * s1.reshape(1, -1, 1, 1) + t1.reshape(1, -1, 1, 1), 0.0)
    a = upsample2x_bilinear(a)
    h = fused_conv3x3(a, p["c1_w9"], p["c1_b"])
    s2, t2 = bn_affine(h, p["b2_g"], p["b2_b"])
    # Shortcut: 1x1 conv commuted before the upsample (exact for per-pixel
    # affine ops) -> runs at the pre-upsample resolution.
    sc = upsample2x_bilinear(conv2d_1x1(x, p["sc_w"], p["sc_b"]))
    return fused_conv3x3(h, p["c2_w9"], p["c2_b"],
                         bn_scale=s2, bn_shift=t2, shortcut=sc)


def decoder_forward(kp, x, enc_hidden_layers, *, ngf, bottom_width,
                    skip_connections=False):
    assert len(enc_hidden_layers) == 9
    # TODO(synk): skip_connections=True branch (encoder-feature adds) not wired;
    # the reference module defaults to skip_connections=False.
    bsz = x.shape[0]
    h = linear(x, kp["l1_wt"], kp["l1_b"])
    h = h.reshape(bsz, ngf, bottom_width, bottom_width)      # nn.Unflatten -> NCHW
    for blk in kp["blocks"]:
        h = gblock_forward(blk, h)
    s8, t8 = bn_affine(h, kp["b8_g"], kp["b8_b"])
    return fused_conv3x3(h, kp["c8_w9"], kp["c8_b"],
                         bn_scale=s8, bn_shift=t8, activation="tanh")


# ------------------------------- parameters --------------------------------------

def init_params(key, nz, ngf, bottom_width, n_encoders):
    """PyTorch-layout f32 parameters (nn.Linear (out,in), nn.Conv2d OIHW)."""
    ks = iter(jax.random.split(key, 128))

    def w_init(shape, scale=0.1):
        return scale * jax.random.normal(next(ks), shape, jnp.float32)

    p = {}
    out_l1 = bottom_width ** 2 * ngf
    p["l1_w"] = w_init((out_l1, nz * n_encoders))
    p["l1_b"] = jnp.zeros((out_l1,), jnp.float32)

    chans = [ngf >> i for i in range(7)]
    blocks = []
    for i in range(6):
        cin, cout = chans[i], chans[i + 1]
        blocks.append(dict(
            b1_g=jnp.ones((cin,), jnp.float32), b1_b=jnp.zeros((cin,), jnp.float32),
            c1_w=w_init((cout, cin, 3, 3)), c1_b=jnp.zeros((cout,), jnp.float32),
            b2_g=jnp.ones((cout,), jnp.float32), b2_b=jnp.zeros((cout,), jnp.float32),
            c2_w=w_init((cout, cout, 3, 3)), c2_b=jnp.zeros((cout,), jnp.float32),
            sc_w=w_init((cout, cin)), sc_b=jnp.zeros((cout,), jnp.float32),
        ))
    p["blocks"] = blocks
    p["b8_g"] = jnp.ones((chans[-1],), jnp.float32)
    p["b8_b"] = jnp.zeros((chans[-1],), jnp.float32)
    p["c8_w"] = w_init((3, chans[-1], 3, 3))
    p["c8_b"] = jnp.zeros((3,), jnp.float32)
    return p


def prep_params(p):
    """One-time conversion to kernel-ready layouts (hoisted out of the forward)."""
    kp = {
        "l1_wt": p["l1_w"].T.astype(jnp.bfloat16),
        "l1_b": p["l1_b"],
        "b8_g": p["b8_g"], "b8_b": p["b8_b"],
        "c8_w9": conv_w_to_taps(p["c8_w"]), "c8_b": p["c8_b"],
        "blocks": [],
    }
    for blk in p["blocks"]:
        kp["blocks"].append(dict(
            b1_g=blk["b1_g"], b1_b=blk["b1_b"],
            c1_w9=conv_w_to_taps(blk["c1_w"]), c1_b=blk["c1_b"],
            b2_g=blk["b2_g"], b2_b=blk["b2_b"],
            c2_w9=conv_w_to_taps(blk["c2_w"]), c2_b=blk["c2_b"],
            sc_w=blk["sc_w"], sc_b=blk["sc_b"],
        ))
    return kp


# ------------------------- pure-JAX reference (self-check) -----------------------

def _bf(x):
    return x.astype(jnp.bfloat16).astype(jnp.float32)


def _ref_bn_relu(x, gamma, beta, eps=1e-5):
    mean = jnp.mean(x, axis=(0, 2, 3))
    var = jnp.maximum(jnp.mean(x * x, axis=(0, 2, 3)) - mean * mean, 0.0)
    scale = gamma * lax.rsqrt(var + eps)
    shift = beta - mean * scale
    return jnp.maximum(x * scale.reshape(1, -1, 1, 1) + shift.reshape(1, -1, 1, 1), 0.0)


def _ref_conv3x3(x, w, b):
    y = lax.conv_general_dilated(_bf(x), _bf(w), (1, 1), [(1, 1), (1, 1)],
                                 dimension_numbers=("NCHW", "OIHW", "NCHW"),
                                 precision=lax.Precision.HIGHEST)
    return y + b.reshape(1, -1, 1, 1)


def _ref_conv1x1(x, w, b):
    y = lax.conv_general_dilated(x, w[:, :, None, None], (1, 1), [(0, 0), (0, 0)],
                                 dimension_numbers=("NCHW", "OIHW", "NCHW"),
                                 precision=lax.Precision.HIGHEST)
    return y + b.reshape(1, -1, 1, 1)


def _ref_gblock(p, x):
    h = _ref_bn_relu(x, p["b1_g"], p["b1_b"])
    h = upsample2x_bilinear(h)
    h = _ref_conv3x3(h, p["c1_w"], p["c1_b"])
    h = _ref_bn_relu(h, p["b2_g"], p["b2_b"])
    h = _ref_conv3x3(h, p["c2_w"], p["c2_b"])
    sc = _ref_conv1x1(upsample2x_bilinear(x), p["sc_w"], p["sc_b"])  # original order
    return h + sc


def ref_decoder_forward(p, x, *, ngf, bottom_width):
    bsz = x.shape[0]
    h = jnp.dot(_bf(x), _bf(p["l1_w"]).T, precision=lax.Precision.HIGHEST) + p["l1_b"]
    h = h.reshape(bsz, ngf, bottom_width, bottom_width)
    for blk in p["blocks"]:
        h = _ref_gblock(blk, h)
    h = _ref_bn_relu(h, p["b8_g"], p["b8_b"])
    return jnp.tanh(_ref_conv3x3(h, p["c8_w"], p["c8_b"]))


# ------------------------------- main ---------------------------------------------

if __name__ == "__main__":
    # Small, module-consistent shapes: nz=16, ngf=64 (so ngf>>6 = 1), bottom_width=4.
    nz, ngf, bottom_width, n_encoders, batch = 16, 64, 4, 2, 2

    key = jax.random.PRNGKey(0)
    pkey, xkey = jax.random.split(key)
    params = init_params(pkey, nz, ngf, bottom_width, n_encoders)
    kparams = prep_params(params)
    x = jax.random.normal(xkey, (batch, nz * n_encoders), jnp.float32)
    enc_hidden_layers = [None] * 9   # unused: skip_connections=False

    # Unit check (tightened): fused conv kernel vs lax.conv, both on bf16-rounded
    # operands with f32 accumulation; covers both the VPU and the MXU tap paths.
    for cin_t, cout_t in ((4, 5), (16, 8)):
        xc = jax.random.normal(jax.random.PRNGKey(1), (2, cin_t, 8, 8), jnp.float32)
        wc = jax.random.normal(jax.random.PRNGKey(2), (cout_t, cin_t, 3, 3), jnp.float32)
        bc = jax.random.normal(jax.random.PRNGKey(3), (cout_t,), jnp.float32)
        got = fused_conv3x3(xc, conv_w_to_taps(wc), bc)
        ref = _ref_conv3x3(xc, wc, bc)
        assert jnp.allclose(got, ref, atol=2e-3, rtol=2e-3), \
            f"conv3x3 mismatch (cin={cin_t})"

    fwd = jax.jit(functools.partial(decoder_forward, ngf=ngf,
                                    bottom_width=bottom_width))
    y = jax.block_until_ready(fwd(kparams, x, enc_hidden_layers))

    assert y.shape == (batch, 3, bottom_width * 64, bottom_width * 64)
    assert bool(jnp.all(jnp.isfinite(y))) and float(jnp.max(jnp.abs(y))) <= 1.0

    # End-to-end check against a pure-JAX reference of the same forward pass
    # (bf16 matmul operands mimicked; tanh output range is [-1, 1]).
    y_ref = jax.jit(functools.partial(ref_decoder_forward, ngf=ngf,
                                      bottom_width=bottom_width))(params, x)
    err = float(jnp.max(jnp.abs(y - y_ref)))
    assert err < 2e-2, f"decoder mismatch vs reference: max|diff|={err}"

    print("KERNEL_OK")
</pallas_src>

<mosaic_0001>
module attributes {stable_mosaic.version = 11 : i64} {
  func.func @kernel(%arg0: i32, %arg1: memref<1x4x102xf32, #tpu.memory_space<vmem>>, %arg2: memref<9x5x4xbf16, #tpu.memory_space<vmem>>, %arg3: memref<5x1xf32, #tpu.memory_space<vmem>>, %arg4: memref<1x5x80xf32, #tpu.memory_space<vmem>>) attributes {dimension_semantics = [#tpu.dimension_semantics<parallel>], iteration_bounds = array<i64: 2>, scalar_prefetch = 0 : i64, scratch_operands = 0 : i64, tpu.core_type = #tpu.core_type<tc>, window_params = [{transform_indices = @transform_0, window_bounds = array<i64: 1, 4, 102>}, {pipeline_mode = #tpu.pipeline_mode<synchronous>, transform_indices = @transform_1, window_bounds = array<i64: 9, 5, 4>}, {pipeline_mode = #tpu.pipeline_mode<synchronous>, transform_indices = @transform_2, window_bounds = array<i64: 5, 1>}, {transform_indices = @transform_3, window_bounds = array<i64: 1, 5, 80>}]} {
    %c0 = arith.constant 0 : index
    %c0_0 = arith.constant 0 : index
    %c0_1 = arith.constant 0 : index
    %0 = vector.load %arg1[%c0, %c0_0, %c0_1] : memref<1x4x102xf32, #tpu.memory_space<vmem>>, vector<1x4x102xf32>
    %1 = vector.shape_cast %0 : vector<1x4x102xf32> to vector<4x102xf32>
    %2 = arith.truncf %1 : vector<4x102xf32> to vector<4x102xbf16>
    %3 = arith.extf %2 : vector<4x102xbf16> to vector<4x102xf32>
    %c0_2 = arith.constant 0 : index
    %c0_3 = arith.constant 0 : index
    %c0_4 = arith.constant 0 : index
    %4 = vector.load %arg2[%c0_2, %c0_3, %c0_4] : memref<9x5x4xbf16, #tpu.memory_space<vmem>>, vector<9x5x4xbf16>
    %5 = arith.extf %4 : vector<9x5x4xbf16> to vector<9x5x4xf32>
    %6 = vector.extract_strided_slice %3 {offsets = [0, 0], sizes = [4, 80], strides = [1, 1]} : vector<4x102xf32> to vector<4x80xf32>
    %7 = vector.extract_strided_slice %5 {offsets = [0, 0, 0], sizes = [1, 5, 1], strides = [1, 1, 1]} : vector<9x5x4xf32> to vector<1x5x1xf32>
    %8 = vector.shape_cast %7 : vector<1x5x1xf32> to vector<5x1xf32>
    %9 = vector.extract_strided_slice %6 {offsets = [0, 0], sizes = [1, 80], strides = [1, 1]} : vector<4x80xf32> to vector<1x80xf32>
    %10 = vector.broadcast %8 : vector<5x1xf32> to vector<5x80xf32>
    %11 = vector.broadcast %9 : vector<1x80xf32> to vector<5x80xf32>
    %12 = arith.mulf %10, %11 : vector<5x80xf32>
    %13 = vector.extract_strided_slice %5 {offsets = [0, 0, 1], sizes = [1, 5, 1], strides = [1, 1, 1]} : vector<9x5x4xf32> to vector<1x5x1xf32>
    %14 = vector.shape_cast %13 : vector<1x5x1xf32> to vector<5x1xf32>
    %15 = vector.extract_strided_slice %6 {offsets = [1, 0], sizes = [1, 80], strides = [1, 1]} : vector<4x80xf32> to vector<1x80xf32>
    %16 = vector.broadcast %14 : vector<5x1xf32> to vector<5x80xf32>
    %17 = vector.broadcast %15 : vector<1x80xf32> to vector<5x80xf32>
    %18 = arith.mulf %16, %17 : vector<5x80xf32>
    %19 = arith.addf %12, %18 : vector<5x80xf32>
    %20 = vector.extract_strided_slice %5 {offsets = [0, 0, 2], sizes = [1, 5, 1], strides = [1, 1, 1]} : vector<9x5x4xf32> to vector<1x5x1xf32>
    %21 = vector.shape_cast %20 : vector<1x5x1xf32> to vector<5x1xf32>
    %22 = vector.extract_strided_slice %6 {offsets = [2, 0], sizes = [1, 80], strides = [1, 1]} : vector<4x80xf32> to vector<1x80xf32>
    %23 = vector.broadcast %21 : vector<5x1xf32> to vector<5x80xf32>
    %24 = vector.broadcast %22 : vector<1x80xf32> to vector<5x80xf32>
    %25 = arith.mulf %23, %24 : vector<5x80xf32>
    %26 = arith.addf %19, %25 : vector<5x80xf32>
    %27 = vector.extract_strided_slice %5 {offsets = [0, 0, 3], sizes = [1, 5, 1], strides = [1, 1, 1]} : vector<9x5x4xf32> to vector<1x5x1xf32>
    %28 = vector.shape_cast %27 : vector<1x5x1xf32> to vector<5x1xf32>
    %29 = vector.extract_strided_slice %6 {offsets = [3, 0], sizes = [1, 80], strides = [1, 1]} : vector<4x80xf32> to vector<1x80xf32>
    %30 = vector.broadcast %28 : vector<5x1xf32> to vector<5x80xf32>
    %31 = vector.broadcast %29 : vector<1x80xf32> to vector<5x80xf32>
    %32 = arith.mulf %30, %31 : vector<5x80xf32>
    %33 = arith.addf %26, %32 : vector<5x80xf32>
    %34 = vector.extract_strided_slice %3 {offsets = [0, 1], sizes = [4, 80], strides = [1, 1]} : vector<4x102xf32> to vector<4x80xf32>
    %35 = vector.extract_strided_slice %5 {offsets = [1, 0, 0], sizes = [1, 5, 1], strides = [1, 1, 1]} : vector<9x5x4xf32> to vector<1x5x1xf32>
    %36 = vector.shape_cast %35 : vector<1x5x1xf32> to vector<5x1xf32>
    %37 = vector.extract_strided_slice %34 {offsets = [0, 0], sizes = [1, 80], strides = [1, 1]} : vector<4x80xf32> to vector<1x80xf32>
    %38 = vector.broadcast %36 : vector<5x1xf32> to vector<5x80xf32>
    %39 = vector.broadcast %37 : vector<1x80xf32> to vector<5x80xf32>
    %40 = arith.mulf %38, %39 : vector<5x80xf32>
    %41 = arith.addf %33, %40 : vector<5x80xf32>
    %42 = vector.extract_strided_slice %5 {offsets = [1, 0, 1], sizes = [1, 5, 1], strides = [1, 1, 1]} : vector<9x5x4xf32> to vector<1x5x1xf32>
    %43 = vector.shape_cast %42 : vector<1x5x1xf32> to vector<5x1xf32>
    %44 = vector.extract_strided_slice %34 {offsets = [1, 0], sizes = [1, 80], strides = [1, 1]} : vector<4x80xf32> to vector<1x80xf32>
    %45 = vector.broadcast %43 : vector<5x1xf32> to vector<5x80xf32>
    %46 = vector.broadcast %44 : vector<1x80xf32> to vector<5x80xf32>
    %47 = arith.mulf %45, %46 : vector<5x80xf32>
    %48 = arith.addf %41, %47 : vector<5x80xf32>
    %49 = vector.extract_strided_slice %5 {offsets = [1, 0, 2], sizes = [1, 5, 1], strides = [1, 1, 1]} : vector<9x5x4xf32> to vector<1x5x1xf32>
    %50 = vector.shape_cast %49 : vector<1x5x1xf32> to vector<5x1xf32>
    %51 = vector.extract_strided_slice %34 {offsets = [2, 0], sizes = [1, 80], strides = [1, 1]} : vector<4x80xf32> to vector<1x80xf32>
    %52 = vector.broadcast %50 : vector<5x1xf32> to vector<5x80xf32>
    %53 = vector.broadcast %51 : vector<1x80xf32> to vector<5x80xf32>
    %54 = arith.mulf %52, %53 : vector<5x80xf32>
    %55 = arith.addf %48, %54 : vector<5x80xf32>
    %56 = vector.extract_strided_slice %5 {offsets = [1, 0, 3], sizes = [1, 5, 1], strides = [1, 1, 1]} : vector<9x5x4xf32> to vector<1x5x1xf32>
    %57 = vector.shape_cast %56 : vector<1x5x1xf32> to vector<5x1xf32>
    %58 = vector.extract_strided_slice %34 {offsets = [3, 0], sizes = [1, 80], strides = [1, 1]} : vector<4x80xf32> to vector<1x80xf32>
    %59 = vector.broadcast %57 : vector<5x1xf32> to vector<5x80xf32>
    %60 = vector.broadcast %58 : vector<1x80xf32> to vector<5x80xf32>
    %61 = arith.mulf %59, %60 : vector<5x80xf32>
    %62 = arith.addf %55, %61 : vector<5x80xf32>
    %63 = vector.extract_strided_slice %3 {offsets = [0, 2], sizes = [4, 80], strides = [1, 1]} : vector<4x102xf32> to vector<4x80xf32>
    %64 = vector.extract_strided_slice %5 {offsets = [2, 0, 0], sizes = [1, 5, 1], strides = [1, 1, 1]} : vector<9x5x4xf32> to vector<1x5x1xf32>
    %65 = vector.shape_cast %64 : vector<1x5x1xf32> to vector<5x1xf32>
    %66 = vector.extract_strided_slice %63 {offsets = [0, 0], sizes = [1, 80], strides = [1, 1]} : vector<4x80xf32> to vector<1x80xf32>
    %67 = vector.broadcast %65 : vector<5x1xf32> to vector<5x80xf32>
    %68 = vector.broadcast %66 : vector<1x80xf32> to vector<5x80xf32>
    %69 = arith.mulf %67, %68 : vector<5x80xf32>
    %70 = arith.addf %62, %69 : vector<5x80xf32>
    %71 = vector.extract_strided_slice %5 {offsets = [2, 0, 1], sizes = [1, 5, 1], strides = [1, 1, 1]} : vector<9x5x4xf32> to vector<1x5x1xf32>
    %72 = vector.shape_cast %71 : vector<1x5x1xf32> to vector<5x1xf32>
    %73 = vector.extract_strided_slice %63 {offsets = [1, 0], sizes = [1, 80], strides = [1, 1]} : vector<4x80xf32> to vector<1x80xf32>
    %74 = vector.broadcast %72 : vector<5x1xf32> to vector<5x80xf32>
    %75 = vector.broadcast %73 : vector<1x80xf32> to vector<5x80xf32>
    %76 = arith.mulf %74, %75 : vector<5x80xf32>
    %77 = arith.addf %70, %76 : vector<5x80xf32>
    %78 = vector.extract_strided_slice %5 {offsets = [2, 0, 2], sizes = [1, 5, 1], strides = [1, 1, 1]} : vector<9x5x4xf32> to vector<1x5x1xf32>
    %79 = vector.shape_cast %78 : vector<1x5x1xf32> to vector<5x1xf32>
    %80 = vector.extract_strided_slice %63 {offsets = [2, 0], sizes = [1, 80], strides = [1, 1]} : vector<4x80xf32> to vector<1x80xf32>
    %81 = vector.broadcast %79 : vector<5x1xf32> to vector<5x80xf32>
    %82 = vector.broadcast %80 : vector<1x80xf32> to vector<5x80xf32>
    %83 = arith.mulf %81, %82 : vector<5x80xf32>
    %84 = arith.addf %77, %83 : vector<5x80xf32>
    %85 = vector.extract_strided_slice %5 {offsets = [2, 0, 3], sizes = [1, 5, 1], strides = [1, 1, 1]} : vector<9x5x4xf32> to vector<1x5x1xf32>
    %86 = vector.shape_cast %85 : vector<1x5x1xf32> to vector<5x1xf32>
    %87 = vector.extract_strided_slice %63 {offsets = [3, 0], sizes = [1, 80], strides = [1, 1]} : vector<4x80xf32> to vector<1x80xf32>
    %88 = vector.broadcast %86 : vector<5x1xf32> to vector<5x80xf32>
    %89 = vector.broadcast %87 : vector<1x80xf32> to vector<5x80xf32>
    %90 = arith.mulf %88, %89 : vector<5x80xf32>
    %91 = arith.addf %84, %90 : vector<5x80xf32>
    %92 = vector.extract_strided_slice %3 {offsets = [0, 10], sizes = [4, 80], strides = [1, 1]} : vector<4x102xf32> to vector<4x80xf32>
    %93 = vector.extract_strided_slice %5 {offsets = [3, 0, 0], sizes = [1, 5, 1], strides = [1, 1, 1]} : vector<9x5x4xf32> to vector<1x5x1xf32>
    %94 = vector.shape_cast %93 : vector<1x5x1xf32> to vector<5x1xf32>
    %95 = vector.extract_strided_slice %92 {offsets = [0, 0], sizes = [1, 80], strides = [1, 1]} : vector<4x80xf32> to vector<1x80xf32>
    %96 = vector.broadcast %94 : vector<5x1xf32> to vector<5x80xf32>
    %97 = vector.broadcast %95 : vector<1x80xf32> to vector<5x80xf32>
    %98 = arith.mulf %96, %97 : vector<5x80xf32>
    %99 = arith.addf %91, %98 : vector<5x80xf32>
    %100 = vector.extract_strided_slice %5 {offsets = [3, 0, 1], sizes = [1, 5, 1], strides = [1, 1, 1]} : vector<9x5x4xf32> to vector<1x5x1xf32>
    %101 = vector.shape_cast %100 : vector<1x5x1xf32> to vector<5x1xf32>
    %102 = vector.extract_strided_slice %92 {offsets = [1, 0], sizes = [1, 80], strides = [1, 1]} : vector<4x80xf32> to vector<1x80xf32>
    %103 = vector.broadcast %101 : vector<5x1xf32> to vector<5x80xf32>
    %104 = vector.broadcast %102 : vector<1x80xf32> to vector<5x80xf32>
    %105 = arith.mulf %103, %104 : vector<5x80xf32>
    %106 = arith.addf %99, %105 : vector<5x80xf32>
    %107 = vector.extract_strided_slice %5 {offsets = [3, 0, 2], sizes = [1, 5, 1], strides = [1, 1, 1]} : vector<9x5x4xf32> to vector<1x5x1xf32>
    %108 = vector.shape_cast %107 : vector<1x5x1xf32> to vector<5x1xf32>
    %109 = vector.extract_strided_slice %92 {offsets = [2, 0], sizes = [1, 80], strides = [1, 1]} : vector<4x80xf32> to vector<1x80xf32>
    %110 = vector.broadcast %108 : vector<5x1xf32> to vector<5x80xf32>
    %111 = vector.broadcast %109 : vector<1x80xf32> to vector<5x80xf32>
    %112 = arith.mulf %110, %111 : vector<5x80xf32>
    %113 = arith.addf %106, %112 : vector<5x80xf32>
    %114 = vector.extract_strided_slice %5 {offsets = [3, 0, 3], sizes = [1, 5, 1], strides = [1, 1, 1]} : vector<9x5x4xf32> to vector<1x5x1xf32>
    %115 = vector.shape_cast %114 : vector<1x5x1xf32> to vector<5x1xf32>
    %116 = vector.extract_strided_slice %92 {offsets = [3, 0], sizes = [1, 80], strides = [1, 1]} : vector<4x80xf32> to vector<1x80xf32>
    %117 = vector.broadcast %115 : vector<5x1xf32> to vector<5x80xf32>
    %118 = vector.broadcast %116 : vector<1x80xf32> to vector<5x80xf32>
    %119 = arith.mulf %117, %118 : vector<5x80xf32>
    %120 = arith.addf %113, %119 : vector<5x80xf32>
    %121 = vector.extract_strided_slice %3 {offsets = [0, 11], sizes = [4, 80], strides = [1, 1]} : vector<4x102xf32> to vector<4x80xf32>
    %122 = vector.extract_strided_slice %5 {offsets = [4, 0, 0], sizes = [1, 5, 1], strides = [1, 1, 1]} : vector<9x5x4xf32> to vector<1x5x1xf32>
    %123 = vector.shape_cast %122 : vector<1x5x1xf32> to vector<5x1xf32>
    %124 = vector.extract_strided_slice %121 {offsets = [0, 0], sizes = [1, 80], strides = [1, 1]} : vector<4x80xf32> to vector<1x80xf32>
    %125 = vector.broadcast %123 : vector<5x1xf32> to vector<5x80xf32>
    %126 = vector.broadcast %124 : vector<1x80xf32> to vector<5x80xf32>
    %127 = arith.mulf %125, %126 : vector<5x80xf32>
    %128 = arith.addf %120, %127 : vector<5x80xf32>
    %129 = vector.extract_strided_slice %5 {offsets = [4, 0, 1], sizes = [1, 5, 1], strides = [1, 1, 1]} : vector<9x5x4xf32> to vector<1x5x1xf32>
    %130 = vector.shape_cast %129 : vector<1x5x1xf32> to vector<5x1xf32>
    %131 = vector.extract_strided_slice %121 {offsets = [1, 0], sizes = [1, 80], strides = [1, 1]} : vector<4x80xf32> to vector<1x80xf32>
    %132 = vector.broadcast %130 : vector<5x1xf32> to vector<5x80xf32>
    %133 = vector.broadcast %131 : vector<1x80xf32> to vector<5x80xf32>
    %134 = arith.mulf %132, %133 : vector<5x80xf32>
    %135 = arith.addf %128, %134 : vector<5x80xf32>
    %136 = vector.extract_strided_slice %5 {offsets = [4, 0, 2], sizes = [1, 5, 1], strides = [1, 1, 1]} : vector<9x5x4xf32> to vector<1x5x1xf32>
    %137 = vector.shape_cast %136 : vector<1x5x1xf32> to vector<5x1xf32>
    %138 = vector.extract_strided_slice %121 {offsets = [2, 0], sizes = [1, 80], strides = [1, 1]} : vector<4x80xf32> to vector<1x80xf32>
    %139 = vector.broadcast %137 : vector<5x1xf32> to vector<5x80xf32>
    %140 = vector.broadcast %138 : vector<1x80xf32> to vector<5x80xf32>
    %141 = arith.mulf %139, %140 : vector<5x80xf32>
    %142 = arith.addf %135, %141 : vector<5x80xf32>
    %143 = vector.extract_strided_slice %5 {offsets = [4, 0, 3], sizes = [1, 5, 1], strides = [1, 1, 1]} : vector<9x5x4xf32> to vector<1x5x1xf32>
    %144 = vector.shape_cast %143 : vector<1x5x1xf32> to vector<5x1xf32>
    %145 = vector.extract_strided_slice %121 {offsets = [3, 0], sizes = [1, 80], strides = [1, 1]} : vector<4x80xf32> to vector<1x80xf32>
    %146 = vector.broadcast %144 : vector<5x1xf32> to vector<5x80xf32>
    %147 = vector.broadcast %145 : vector<1x80xf32> to vector<5x80xf32>
    %148 = arith.mulf %146, %147 : vector<5x80xf32>
    %149 = arith.addf %142, %148 : vector<5x80xf32>
    %150 = vector.extract_strided_slice %3 {offsets = [0, 12], sizes = [4, 80], strides = [1, 1]} : vector<4x102xf32> to vector<4x80xf32>
    %151 = vector.extract_strided_slice %5 {offsets = [5, 0, 0], sizes = [1, 5, 1], strides = [1, 1, 1]} : vector<9x5x4xf32> to vector<1x5x1xf32>
    %152 = vector.shape_cast %151 : vector<1x5x1xf32> to vector<5x1xf32>
    %153 = vector.extract_strided_slice %150 {offsets = [0, 0], sizes = [1, 80], strides = [1, 1]} : vector<4x80xf32> to vector<1x80xf32>
    %154 = vector.broadcast %152 : vector<5x1xf32> to vector<5x80xf32>
    %155 = vector.broadcast %153 : vector<1x80xf32> to vector<5x80xf32>
    %156 = arith.mulf %154, %155 : vector<5x80xf32>
    %157 = arith.addf %149, %156 : vector<5x80xf32>
    %158 = vector.extract_strided_slice %5 {offsets = [5, 0, 1], sizes = [1, 5, 1], strides = [1, 1, 1]} : vector<9x5x4xf32> to vector<1x5x1xf32>
    %159 = vector.shape_cast %158 : vector<1x5x1xf32> to vector<5x1xf32>
    %160 = vector.extract_strided_slice %150 {offsets = [1, 0], sizes = [1, 80], strides = [1, 1]} : vector<4x80xf32> to vector<1x80xf32>
    %161 = vector.broadcast %159 : vector<5x1xf32> to vector<5x80xf32>
    %162 = vector.broadcast %160 : vector<1x80xf32> to vector<5x80xf32>
    %163 = arith.mulf %161, %162 : vector<5x80xf32>
    %164 = arith.addf %157, %163 : vector<5x80xf32>
    %165 = vector.extract_strided_slice %5 {offsets = [5, 0, 2], sizes = [1, 5, 1], strides = [1, 1, 1]} : vector<9x5x4xf32> to vector<1x5x1xf32>
    %166 = vector.shape_cast %165 : vector<1x5x1xf32> to vector<5x1xf32>
    %167 = vector.extract_strided_slice %150 {offsets = [2, 0], sizes = [1, 80], strides = [1, 1]} : vector<4x80xf32> to vector<1x80xf32>
    %168 = vector.broadcast %166 : vector<5x1xf32> to vector<5x80xf32>
    %169 = vector.broadcast %167 : vector<1x80xf32> to vector<5x80xf32>
    %170 = arith.mulf %168, %169 : vector<5x80xf32>
    %171 = arith.addf %164, %170 : vector<5x80xf32>
    %172 = vector.extract_strided_slice %5 {offsets = [5, 0, 3], sizes = [1, 5, 1], strides = [1, 1, 1]} : vector<9x5x4xf32> to vector<1x5x1xf32>
    %173 = vector.shape_cast %172 : vector<1x5x1xf32> to vector<5x1xf32>
    %174 = vector.extract_strided_slice %150 {offsets = [3, 0], sizes = [1, 80], strides = [1, 1]} : vector<4x80xf32> to vector<1x80xf32>
    %175 = vector.broadcast %173 : vector<5x1xf32> to vector<5x80xf32>
    %176 = vector.broadcast %174 : vector<1x80xf32> to vector<5x80xf32>
    %177 = arith.mulf %175, %176 : vector<5x80xf32>
    %178 = arith.addf %171, %177 : vector<5x80xf32>
    %179 = vector.extract_strided_slice %3 {offsets = [0, 20], sizes = [4, 80], strides = [1, 1]} : vector<4x102xf32> to vector<4x80xf32>
    %180 = vector.extract_strided_slice %5 {offsets = [6, 0, 0], sizes = [1, 5, 1], strides = [1, 1, 1]} : vector<9x5x4xf32> to vector<1x5x1xf32>
    %181 = vector.shape_cast %180 : vector<1x5x1xf32> to vector<5x1xf32>
    %182 = vector.extract_strided_slice %179 {offsets = [0, 0], sizes = [1, 80], strides = [1, 1]} : vector<4x80xf32> to vector<1x80xf32>
    %183 = vector.broadcast %181 : vector<5x1xf32> to vector<5x80xf32>
    %184 = vector.broadcast %182 : vector<1x80xf32> to vector<5x80xf32>
    %185 = arith.mulf %183, %184 : vector<5x80xf32>
    %186 = arith.addf %178, %185 : vector<5x80xf32>
    %187 = vector.extract_strided_slice %5 {offsets = [6, 0, 1], sizes = [1, 5, 1], strides = [1, 1, 1]} : vector<9x5x4xf32> to vector<1x5x1xf32>
    %188 = vector.shape_cast %187 : vector<1x5x1xf32> to vector<5x1xf32>
    %189 = vector.extract_strided_slice %179 {offsets = [1, 0], sizes = [1, 80], strides = [1, 1]} : vector<4x80xf32> to vector<1x80xf32>
    %190 = vector.broadcast %188 : vector<5x1xf32> to vector<5x80xf32>
    %191 = vector.broadcast %189 : vector<1x80xf32> to vector<5x80xf32>
    %192 = arith.mulf %190, %191 : vector<5x80xf32>
    %193 = arith.addf %186, %192 : vector<5x80xf32>
    %194 = vector.extract_strided_slice %5 {offsets = [6, 0, 2], sizes = [1, 5, 1], strides = [1, 1, 1]} : vector<9x5x4xf32> to vector<1x5x1xf32>
    %195 = vector.shape_cast %194 : vector<1x5x1xf32> to vector<5x1xf32>
    %196 = vector.extract_strided_slice %179 {offsets = [2, 0], sizes = [1, 80], strides = [1, 1]} : vector<4x80xf32> to vector<1x80xf32>
    %197 = vector.broadcast %195 : vector<5x1xf32> to vector<5x80xf32>
    %198 = vector.broadcast %196 : vector<1x80xf32> to vector<5x80xf32>
    %199 = arith.mulf %197, %198 : vector<5x80xf32>
    %200 = arith.addf %193, %199 : vector<5x80xf32>
    %201 = vector.extract_strided_slice %5 {offsets = [6, 0, 3], sizes = [1, 5, 1], strides = [1, 1, 1]} : vector<9x5x4xf32> to vector<1x5x1xf32>
    %202 = vector.shape_cast %201 : vector<1x5x1xf32> to vector<5x1xf32>
    %203 = vector.extract_strided_slice %179 {offsets = [3, 0], sizes = [1, 80], strides = [1, 1]} : vector<4x80xf32> to vector<1x80xf32>
    %204 = vector.broadcast %202 : vector<5x1xf32> to vector<5x80xf32>
    %205 = vector.broadcast %203 : vector<1x80xf32> to vector<5x80xf32>
    %206 = arith.mulf %204, %205 : vector<5x80xf32>
    %207 = arith.addf %200, %206 : vector<5x80xf32>
    %208 = vector.extract_strided_slice %3 {offsets = [0, 21], sizes = [4, 80], strides = [1, 1]} : vector<4x102xf32> to vector<4x80xf32>
    %209 = vector.extract_strided_slice %5 {offsets = [7, 0, 0], sizes = [1, 5, 1], strides = [1, 1, 1]} : vector<9x5x4xf32> to vector<1x5x1xf32>
    %210 = vector.shape_cast %209 : vector<1x5x1xf32> to vector<5x1xf32>
    %211 = vector.extract_strided_slice %208 {offsets = [0, 0], sizes = [1, 80], strides = [1, 1]} : vector<4x80xf32> to vector<1x80xf32>
    %212 = vector.broadcast %210 : vector<5x1xf32> to vector<5x80xf32>
    %213 = vector.broadcast %211 : vector<1x80xf32> to vector<5x80xf32>
    %214 = arith.mulf %212, %213 : vector<5x80xf32>
    %215 = arith.addf %207, %214 : vector<5x80xf32>
    %216 = vector.extract_strided_slice %5 {offsets = [7, 0, 1], sizes = [1, 5, 1], strides = [1, 1, 1]} : vector<9x5x4xf32> to vector<1x5x1xf32>
    %217 = vector.shape_cast %216 : vector<1x5x1xf32> to vector<5x1xf32>
    %218 = vector.extract_strided_slice %208 {offsets = [1, 0], sizes = [1, 80], strides = [1, 1]} : vector<4x80xf32> to vector<1x80xf32>
    %219 = vector.broadcast %217 : vector<5x1xf32> to vector<5x80xf32>
    %220 = vector.broadcast %218 : vector<1x80xf32> to vector<5x80xf32>
    %221 = arith.mulf %219, %220 : vector<5x80xf32>
    %222 = arith.addf %215, %221 : vector<5x80xf32>
    %223 = vector.extract_strided_slice %5 {offsets = [7, 0, 2], sizes = [1, 5, 1], strides = [1, 1, 1]} : vector<9x5x4xf32> to vector<1x5x1xf32>
    %224 = vector.shape_cast %223 : vector<1x5x1xf32> to vector<5x1xf32>
    %225 = vector.extract_strided_slice %208 {offsets = [2, 0], sizes = [1, 80], strides = [1, 1]} : vector<4x80xf32> to vector<1x80xf32>
    %226 = vector.broadcast %224 : vector<5x1xf32> to vector<5x80xf32>
    %227 = vector.broadcast %225 : vector<1x80xf32> to vector<5x80xf32>
    %228 = arith.mulf %226, %227 : vector<5x80xf32>
    %229 = arith.addf %222, %228 : vector<5x80xf32>
    %230 = vector.extract_strided_slice %5 {offsets = [7, 0, 3], sizes = [1, 5, 1], strides = [1, 1, 1]} : vector<9x5x4xf32> to vector<1x5x1xf32>
    %231 = vector.shape_cast %230 : vector<1x5x1xf32> to vector<5x1xf32>
    %232 = vector.extract_strided_slice %208 {offsets = [3, 0], sizes = [1, 80], strides = [1, 1]} : vector<4x80xf32> to vector<1x80xf32>
    %233 = vector.broadcast %231 : vector<5x1xf32> to vector<5x80xf32>
    %234 = vector.broadcast %232 : vector<1x80xf32> to vector<5x80xf32>
    %235 = arith.mulf %233, %234 : vector<5x80xf32>
    %236 = arith.addf %229, %235 : vector<5x80xf32>
    %237 = vector.extract_strided_slice %3 {offsets = [0, 22], sizes = [4, 80], strides = [1, 1]} : vector<4x102xf32> to vector<4x80xf32>
    %238 = vector.extract_strided_slice %5 {offsets = [8, 0, 0], sizes = [1, 5, 1], strides = [1, 1, 1]} : vector<9x5x4xf32> to vector<1x5x1xf32>
    %239 = vector.shape_cast %238 : vector<1x5x1xf32> to vector<5x1xf32>
    %240 = vector.extract_strided_slice %237 {offsets = [0, 0], sizes = [1, 80], strides = [1, 1]} : vector<4x80xf32> to vector<1x80xf32>
    %241 = vector.broadcast %239 : vector<5x1xf32> to vector<5x80xf32>
    %242 = vector.broadcast %240 : vector<1x80xf32> to vector<5x80xf32>
    %243 = arith.mulf %241, %242 : vector<5x80xf32>
    %244 = arith.addf %236, %243 : vector<5x80xf32>
    %245 = vector.extract_strided_slice %5 {offsets = [8, 0, 1], sizes = [1, 5, 1], strides = [1, 1, 1]} : vector<9x5x4xf32> to vector<1x5x1xf32>
    %246 = vector.shape_cast %245 : vector<1x5x1xf32> to vector<5x1xf32>
    %247 = vector.extract_strided_slice %237 {offsets = [1, 0], sizes = [1, 80], strides = [1, 1]} : vector<4x80xf32> to vector<1x80xf32>
    %248 = vector.broadcast %246 : vector<5x1xf32> to vector<5x80xf32>
    %249 = vector.broadcast %247 : vector<1x80xf32> to vector<5x80xf32>
    %250 = arith.mulf %248, %249 : vector<5x80xf32>
    %251 = arith.addf %244, %250 : vector<5x80xf32>
    %252 = vector.extract_strided_slice %5 {offsets = [8, 0, 2], sizes = [1, 5, 1], strides = [1, 1, 1]} : vector<9x5x4xf32> to vector<1x5x1xf32>
    %253 = vector.shape_cast %252 : vector<1x5x1xf32> to vector<5x1xf32>
    %254 = vector.extract_strided_slice %237 {offsets = [2, 0], sizes = [1, 80], strides = [1, 1]} : vector<4x80xf32> to vector<1x80xf32>
    %255 = vector.broadcast %253 : vector<5x1xf32> to vector<5x80xf32>
    %256 = vector.broadcast %254 : vector<1x80xf32> to vector<5x80xf32>
    %257 = arith.mulf %255, %256 : vector<5x80xf32>
    %258 = arith.addf %251, %257 : vector<5x80xf32>
    %259 = vector.extract_strided_slice %5 {offsets = [8, 0, 3], sizes = [1, 5, 1], strides = [1, 1, 1]} : vector<9x5x4xf32> to vector<1x5x1xf32>
    %260 = vector.shape_cast %259 : vector<1x5x1xf32> to vector<5x1xf32>
    %261 = vector.extract_strided_slice %237 {offsets = [3, 0], sizes = [1, 80], strides = [1, 1]} : vector<4x80xf32> to vector<1x80xf32>
    %262 = vector.broadcast %260 : vector<5x1xf32> to vector<5x80xf32>
    %263 = vector.broadcast %261 : vector<1x80xf32> to vector<5x80xf32>
    %264 = arith.mulf %262, %263 : vector<5x80xf32>
    %265 = arith.addf %258, %264 : vector<5x80xf32>
    %c0_5 = arith.constant 0 : index
    %c0_6 = arith.constant 0 : index
    %266 = vector.load %arg3[%c0_5, %c0_6] : memref<5x1xf32, #tpu.memory_space<vmem>>, vector<5x1xf32>
    %267 = vector.broadcast %266 : vector<5x1xf32> to vector<5x80xf32>
    %268 = arith.addf %265, %267 : vector<5x80xf32>
    %c0_7 = arith.constant 0 : index
    %c0_8 = arith.constant 0 : index
    %c0_9 = arith.constant 0 : index
    %269 = vector.load %arg4[%c0_7, %c0_8, %c0_9] : memref<1x5x80xf32, #tpu.memory_space<vmem>>, vector<1x5x80xf32>
    %270 = vector.shape_cast %269 : vector<1x5x80xf32> to vector<5x80xf32>
    %271 = vector.shape_cast %268 : vector<5x80xf32> to vector<1x5x80xf32>
    tpu.vector_store %arg4[%c0_7, %c0_8, %c0_9], %271 {strides = array<i32>} : memref<1x5x80xf32, #tpu.memory_space<vmem>>, vector<1x5x80xf32>,
    return
  }
  func.func @transform_0(%arg0: i32) -> (i32, i32, i32) {
    %c0_i32 = arith.constant 0 : i32
    %c0_i32_0 = arith.constant 0 : i32
    %c0_i32_1 = arith.constant 0 : i32
    return %arg0, %c0_i32, %c0_i32_0 : i32, i32, i32
  }
  func.func @transform_1(%arg0: i32) -> (i32, i32, i32) {
    %c0_i32 = arith.constant 0 : i32
    %c0_i32_0 = arith.constant 0 : i32
    %c0_i32_1 = arith.constant 0 : i32
    %c0_i32_2 = arith.constant 0 : i32
    return %c0_i32, %c0_i32_0, %c0_i32_1 : i32, i32, i32
  }
  func.func @transform_2(%arg0: i32) -> (i32, i32) {
    %c0_i32 = arith.constant 0 : i32
    %c0_i32_0 = arith.constant 0 : i32
    %c0_i32_1 = arith.constant 0 : i32
    return %c0_i32, %c0_i32_0 : i32, i32
  }
  func.func @transform_3(%arg0: i32) -> (i32, i32, i32) {
    %c0_i32 = arith.constant 0 : i32
    %c0_i32_0 = arith.constant 0 : i32
    %c0_i32_1 = arith.constant 0 : i32
    return %arg0, %c0_i32, %c0_i32_0 : i32, i32, i32
  }
}

</mosaic_0001>

<bundles_post_ra>
// kernel: tpu_custom_call.1
= control target key start
LH: loop header
LB: loop body
LE: loop exit
PB: predicated region body
PF: predicated region fallthrough
CT: control target
= control target key end

     0   :  { %s772_s12 = smov 0   ;;  %s898_s0 = inlined_call_operand.vmem [shape: f32[2,4,102], index: 0, kind: input, shape index: {}]   ;;  %s899_s1 = inlined_call_operand.vmem [shape: bf16[9,5,4], index: 1, kind: input, shape index: {}]   ;;  %s900_s2 = inlined_call_operand.vmem [shape: f32[5,1], index: 2, kind: input, shape index: {}]   ;;  %s901_s3 = inlined_call_operand.vmem [shape: f32[2,5,80], index: 3, kind: output, shape index: {}]  }
   0x1 LB: > { %s605_s13 = sadd.s32 4294967295, %s738_s12   ;;  %p609_p0 = scmp.ge.s32.totalorder %s738_s12, 1  ;;  %s738_s12 = sphi %s772_s12, %s13_s12  }
   0x2   : > { %p136_p1 = scmp.lt.s32.totalorder %s738_s12, 3 }
   0x4   : > { %p137_p2 = pnand %p609_p0, %p136_p1 }
   0x5   : > { %p158_p3 = scmp.lt.s32.totalorder (!%p137_p2), %s605_s13, 1  ;;  %s744_s9 = smov (!%p137_p2), 126  }
   0x6   : > { %140 = sbr.rel (%p137_p2) target bundleno = 343 (0x157), region = 32  ;;  %s745_s10 = smov (!%p137_p2), 127  }
   0x7   : > { %s746_s11 = smov (!%p137_p2), 118   ;;  %s747_s14 = smov (!%p137_p2), 117  }
   0x8   : > { %s748_s15 = smov (!%p137_p2), 116   ;;  %s749_s16 = smov (!%p137_p2), 108  }
   0x9   : > { %s750_s17 = smov (!%p137_p2), 107   ;;  %s751_s18 = smov (!%p137_p2), 106  }
   0xb   : > { %v169_v0 = vld [vmem:[%s899_s1] sm:$0x7]  ;;  %v170_v1 = vld [vmem:[%s899_s1 + $0x4] sm:$0x7]  ;;  %v740_v2 = vmov 2   ;;  %v741_v3 = vmov 0  }
   0xc   : > { %640 = vset.pattern.permute.xlu1 %v740_v2  ;;  %634 = vset.pattern.permute.xlu0 %v741_v3  ;;  %v178_v4 = vunpack.c.l.bf16 %v169_v0  ;;  %v179_v5 = vunpack.c.l.bf16 %v170_v1  ;;  %v171_v6 = vld [vmem:[%s899_s1 + $0x8] sm:$0x7]  ;;  %v172_v7 = vld [vmem:[%s899_s1 + $0xc] sm:$0x7]  ;;  %v742_v10 = vmov 1   ;;  %v743_v13 = vmov 3  }
   0xd   : > { %v180_v8 = vunpack.c.l.bf16 %v171_v6  ;;  %v181_v9 = vunpack.c.l.bf16 %v172_v7  ;;  %663 = vset.pattern.permute.xlu2 %v742_v10  ;;  %v173_v14 = vld [vmem:[%s899_s1 + $0x10] sm:$0x7]  ;;  %v174_v15 = vld [vmem:[%s899_s1 + $0x14] sm:$0x7]  ;;  %v175_v19 = vld [vmem:[%s899_s1 + $0x18] sm:$0x7] }
   0xe   : > { %v641_v11 = vpack.i.bf16 %v179_v5, %v178_v4  ;;  %v182_v16 = vunpack.c.l.bf16 %v173_v14  ;;  %v183_v17 = vunpack.c.l.bf16 %v174_v15  ;;  %v176_v20 = vld [vmem:[%s899_s1 + $0x1c] sm:$0x7]  ;;  %v184_v21 = vunpack.c.l.bf16 %v175_v19  ;;  %v177_v24 = vld [vmem:[%s899_s1 + $0x20] sm:$0x7]  ;;  %s903_s13 = smov (!%p158_p3, %s605_s13), 1 }
   0xf   : > { %v664_v12 = vpack.i.bf16 %v181_v9, %v180_v8  ;;  %v185_v22 = vunpack.c.l.bf16 %v176_v20  ;;  %v186_v25 = vunpack.c.l.bf16 %v177_v24  ;;  %s610_s5 = sshll.u32 %s903_s13, 2  ;;  %s611_s21 = sshll.u32 %s903_s13, 3  ;;  %vm550_vm0 = vcmask 651264  }
  0x10   : > { %642 = vperm.xlu1 %640, %v641_v11   ;;  %636 = vperm.xlu0 %634, %v641_v11   ;;  %v691_v18 = vpack.i.bf16 %v183_v17, %v182_v16  ;;  %s161_s8 = scalar_lea.vmem %s898_s0, %s610_s5  ;;  %s165_s24 = scalar_lea.vmem %s901_s3, %s611_s21 }
  0x11   : > { %665 = vperm.xlu2 %663, %v664_v12   ;;  %v721_v23 = vpack.i.bf16 %v185_v22, %v184_v21  ;;  %v166_v26 = vld [vmem:[%s161_s8] sm:$0xf] }
  0x12   : > { %v167_v28 = vpack.c.bf16 %v166_v26, %v166_v26 }
  0x14   : > { %v168_v29 = vunpack.c.l.bf16 %v167_v28 }
  0x16   : > { %v817_v30 = vperm.slane %v168_v29, 2  ;;  %v824_v34 = vperm.slane %v168_v29, 0  ;;  %v831_v48 = vperm.slane %v168_v29, 3  ;;  %v838_v54 = vperm.slane %v168_v29, 1 }
  0x18   : > { %646 = vset.pattern.permute.xlu1 %v743_v13  ;;  %653 = vperm.xlu0 %634, %v664_v12  }
  0x19   : > { %648 = vperm.xlu1 %646, %v641_v11   ;;  %669 = vset.pattern.permute.xlu2 %v740_v2 }
  0x1a   : > { %671 = vperm.xlu2 %669, %v664_v12  }
  0x20   : > { %657 = vset.pattern.permute.xlu0 %v742_v10 }
  0x21   : > { %676 = vperm.xlu1 %646, %v664_v12   ;;  %659 = vperm.xlu0 %657, %v641_v11  }
  0x22   : > { %692 = vperm.xlu2 %669, %v691_v18  }
  0x29   : > { %687 = vperm.xlu0 %657, %v691_v18   ;;  %680 = vset.pattern.permute.xlu1 %v741_v3 }
  0x2a   : > { %682 = vperm.xlu1 %680, %v691_v18   ;;  %696 = vset.pattern.permute.xlu2 %v743_v13 }
  0x2b   : > { %698 = vperm.xlu2 %696, %v691_v18  }
  0x31   : > { %720 = vset.pattern.permute.xlu0 %v743_v13 }
  0x32   : > { %708 = vset.pattern.permute.xlu1 %v742_v10  ;;  %722 = vperm.xlu0 %720, %v721_v23  }
  0x33   : > { %710 = vperm.xlu1 %708, %v721_v23   ;;  %702 = vset.pattern.permute.xlu2 %v741_v3 }
  0x34   : > { %704 = vperm.xlu2 %702, %v721_v23  }
  0x3a   : > { %731 = vset.pattern.permute.xlu0 %v741_v3 }
  0x3b   : > { %726 = vset.pattern.permute.xlu1 %v741_v3 }
  0x3c   : > { %504 = vperm.xlu1 %726, %v186_v25   ;;  %714 = vset.pattern.permute.xlu2 %v740_v2 }
  0x3d   : > { %716 = vperm.xlu2 %714, %v721_v23  }
  0x44   : > { %728 = vset.pattern.permute.xlu1 %v740_v2 }
  0x45   : > { %524 = vperm.xlu1 %728, %v186_v25   ;;  %727 = vset.pattern.permute.xlu2 %v742_v10 }
  0x46   : > { %514 = vperm.xlu2 %727, %v186_v25  }
  0x4e   : > { %729 = vset.pattern.permute.xlu2 %v743_v13 }
  0x4f   : > { %534 = vperm.xlu2 %729, %v186_v25  }
  0x57   : > { %730 = vset.pattern.permute.xlu2 %v741_v3 }
  0x6b   : > { %v666_v27 = vpop.permute.xlu2 %665 }
  0x6c   : > { %v667_v53 = vunpack.i.l.bf16 %v666_v27  ;;  %v668_v5 = vunpack.i.h.bf16 %v666_v27 }
  0x6e   : > { %v271_v61 = vmul.f32 %v667_v53, %v838_v54  ;;  %v312_v10 = vmul.f32 %v668_v5, %v838_v54 }
  0x74   : > { %v819_v31 = vpop.permute.xlu2 %671 }
  0x75   : > { %v673_v32 = vunpack.i.l.bf16 %v819_v31  ;;  %v674_v23 = vunpack.i.h.bf16 %v819_v31 }
  0x77   : > { %v281_v33 = vmul.f32 %v673_v32, %v817_v30  ;;  %v322_v27 = vmul.f32 %v674_v23, %v817_v30 }
  0x79   : > { %283 = vrot.lane.b32.xlu0 %v281_v33, %s744_s9 }
  0x7c   : > { %v693_v51 = vpop.permute.xlu2 %692 }
  0x7d   : > { %v695_v14 = vunpack.i.h.bf16 %v693_v51  ;;  %v694_v22 = vunpack.i.l.bf16 %v693_v51 }
  0x7f   : > { %v404_v19 = vmul.f32 %v695_v14, %v817_v30  ;;  %v363_v25 = vmul.f32 %v694_v22, %v817_v30 }
  0x82   : > { %v643_v35 = vpop.permute.xlu1 %642  ;;  %v637_v36 = vpop.permute.xlu0 %636 }
  0x83   : > { %v645_v37 = vunpack.i.h.bf16 %v643_v35  ;;  %v639_v38 = vunpack.i.h.bf16 %v637_v36  ;;  %v638_v39 = vunpack.i.l.bf16 %v637_v36  ;;  %v644_v57 = vunpack.i.l.bf16 %v643_v35 }
  0x85   : > { %v240_v40 = vmul.f32 %v645_v37, %v817_v30  ;;  %v193_v41 = vmul.f32 %v638_v39, %v824_v34  ;;  %v220_v42 = vmul.f32 %v639_v38, %v824_v34  ;;  %v699_v62 = vpop.permute.xlu2 %698  ;;  %v206_v2 = vmul.f32 %v644_v57, %v817_v30 }
  0x86   : > { %v700_v4 = vunpack.i.l.bf16 %v699_v62  ;;  %v701_v36 = vunpack.i.h.bf16 %v699_v62 }
  0x87   : > { %242 = vrot.lane.b32.xlu1 %v240_v40, %s745_s10  ;;  %222 = vrot.lane.b32.xlu2 %v220_v42, %s745_s10 }
  0x88   : > { %v373_v8 = vmul.f32 %v700_v4, %v831_v48  ;;  %v414_v40 = vmul.f32 %v701_v36, %v831_v48 }
  0x8a   : > { %v654_v43 = vpop.permute.xlu0 %653 }
  0x8b   : > { %v656_v44 = vunpack.i.h.bf16 %v654_v43  ;;  %v655_v45 = vunpack.i.l.bf16 %v654_v43  ;;  %v649_v46 = vpop.permute.xlu1 %648 }
  0x8c   : > { %v650_v47 = vunpack.i.l.bf16 %v649_v46  ;;  %v651_v6 = vunpack.i.h.bf16 %v649_v46 }
  0x8d   : > { %v261_v49 = vmul.f32 %v655_v45, %v824_v34  ;;  %v302_v50 = vmul.f32 %v656_v44, %v824_v34 }
  0x8e   : > { %v213_v52 = vmul.f32 %v650_v47, %v831_v48  ;;  %v250_v11 = vmul.f32 %v651_v6, %v831_v48  ;;  %v705_v18 = vpop.permute.xlu2 %704 }
  0x8f   : > { %304 = vrot.lane.b32.xlu0 %v302_v50, %s746_s11  ;;  %263 = vrot.lane.b32.xlu1 %v261_v49, %s744_s9  ;;  %v706_v21 = vunpack.i.l.bf16 %v705_v18  ;;  %v707_v38 = vunpack.i.h.bf16 %v705_v18 }
  0x91   : > { %v425_v24 = vmul.f32 %v706_v21, %v824_v34  ;;  %v466_v43 = vmul.f32 %v707_v38, %v824_v34 }
  0x93   : > { %v677_v55 = vpop.permute.xlu1 %676  ;;  %v660_v56 = vpop.permute.xlu0 %659 }
  0x94   : > { %v679_v58 = vunpack.i.h.bf16 %v677_v55  ;;  %v662_v59 = vunpack.i.h.bf16 %v660_v56  ;;  %v661_v60 = vunpack.i.l.bf16 %v660_v56  ;;  %v678_v15 = vunpack.i.l.bf16 %v677_v55 }
  0x96   : > { %v332_v63 = vmul.f32 %v679_v58, %v831_v48  ;;  %v199_v0 = vmul.f32 %v661_v60, %v838_v54  ;;  %v230_v1 = vmul.f32 %v662_v59, %v838_v54  ;;  %v291_v20 = vmul.f32 %v678_v15, %v831_v48 }
  0x97   : > { %273 = vrot.lane.b32.xlu1 %v271_v61, %s744_s9  ;;  %v717_v39 = vpop.permute.xlu2 %716 }
  0x98   : > { %v200_v3 = vadd.f32 %v199_v0, %v193_v41  ;;  %334 = vrot.lane.b32.xlu0 %v332_v63, %s746_s11  ;;  %232 = vrot.lane.b32.xlu2 %v230_v1, %s745_s10  ;;  %v718_v44 = vunpack.i.l.bf16 %v717_v39  ;;  %v719_v55 = vunpack.i.h.bf16 %v717_v39  ;;  %v543_v0 = vld [vmem:[%s900_s2] sm:$0x1f] }
  0x9a   : > { %v207_v7 = vadd.f32 %v206_v2, %v200_v3  ;;  %v445_v49 = vmul.f32 %v718_v44, %v817_v30  ;;  %v486_v58 = vmul.f32 %v719_v55, %v817_v30 }
  0x9b   : > { %v688_v12 = vpop.permute.xlu0 %687 }
  0x9c   : > { %v849_v9 = vadd.f32 %v213_v52, %v207_v7  ;;  %v689_v13 = vunpack.i.l.bf16 %v688_v12  ;;  %v683_v16 = vpop.permute.xlu1 %682  ;;  %v690_v37 = vunpack.i.h.bf16 %v688_v12 }
  0x9d   : > { %v685_v28 = vunpack.i.h.bf16 %v683_v16  ;;  %v684_v29 = vunpack.i.l.bf16 %v683_v16 }
  0x9e   : > { %v353_v17 = vmul.f32 %v689_v13, %v838_v54  ;;  %v394_v42 = vmul.f32 %v690_v37, %v838_v54 }
  0x9f   : > { %314 = vrot.lane.b32.xlu1 %v312_v10, %s746_s11  ;;  %v384_v33 = vmul.f32 %v685_v28, %v824_v34  ;;  %v343_v31 = vmul.f32 %v684_v29, %v824_v34 }
  0xa0   : > { %375 = vrot.lane.b32.xlu0 %v373_v8, %s747_s14  ;;  %252 = vrot.lane.b32.xlu2 %v250_v11, %s745_s10  ;;  %v515_v59 = vpop.permute.xlu2 %514 }
  0xa1   : > { %v517_v61 = vmul.f32 %v515_v59, %v838_v54 }
  0xa4   : > { %v723_v41 = vpop.permute.xlu0 %722 }
  0xa5   : > { %v711_v26 = vpop.permute.xlu1 %710  ;;  %v725_v46 = vunpack.i.h.bf16 %v723_v41  ;;  %v724_v47 = vunpack.i.l.bf16 %v723_v41 }
  0xa6   : > { %v712_v32 = vunpack.i.l.bf16 %v711_v26  ;;  %v713_v52 = vunpack.i.h.bf16 %v711_v26 }
  0xa7   : > { %355 = vrot.lane.b32.xlu1 %v353_v17, %s747_s14  ;;  %v455_v50 = vmul.f32 %v724_v47, %v831_v48  ;;  %v496_v51 = vmul.f32 %v725_v46, %v831_v48 }
  0xa8   : > { %406 = vrot.lane.b32.xlu0 %v404_v19, %s748_s15  ;;  %293 = vrot.lane.b32.xlu2 %v291_v20, %s744_s9  ;;  %v435_v35 = vmul.f32 %v712_v32, %v838_v54  ;;  %v476_v57 = vmul.f32 %v713_v52, %v838_v54 }
  0xa9   : > { %v535_v62 = vpop.permute.xlu2 %534 }
  0xaa   : > { %v537_v63 = vmul.f32 %v535_v62, %v831_v48 }
  0xae   : > { %v505_v45 = vpop.permute.xlu1 %504 }
  0xaf   : > { %365 = vrot.lane.b32.xlu1 %v363_v25, %s747_s14  ;;  %v507_v60 = vmul.f32 %v505_v45, %v824_v34 }
  0xb0   : > { %427 = vrot.lane.b32.xlu0 %v425_v24, %s749_s16  ;;  %324 = vrot.lane.b32.xlu2 %v322_v27, %s746_s11 }
  0xb7   : > { %386 = vrot.lane.b32.xlu1 %v384_v33, %s748_s15  ;;  %v525_v53 = vpop.permute.xlu1 %524 }
  0xb8   : > { %437 = vrot.lane.b32.xlu0 %v435_v35, %s749_s16  ;;  %345 = vrot.lane.b32.xlu2 %v343_v31, %s747_s14  ;;  %v527_v56 = vmul.f32 %v525_v53, %v817_v30 }
  0xbf   : > { %416 = vrot.lane.b32.xlu1 %v414_v40, %s748_s15 }
  0xc0   : > { %468 = vrot.lane.b32.xlu0 %v466_v43, %s750_s17  ;;  %396 = vrot.lane.b32.xlu2 %v394_v42, %s748_s15 }
  0xc7   : > { %447 = vrot.lane.b32.xlu1 %v445_v49, %s749_s16 }
  0xc8   : > { %457 = vrot.lane.b32.xlu2 %v455_v50, %s749_s16  ;;  %498 = vrot.lane.b32.xlu0 %v496_v51, %s750_s17 }
  0xcf   : > { %478 = vrot.lane.b32.xlu1 %v476_v57, %s750_s17 }
  0xd0   : > { %488 = vrot.lane.b32.xlu2 %v486_v58, %s750_s17  ;;  %529 = vrot.lane.b32.xlu0 %v527_v56, %s751_s18 }
  0xd7   : > { %509 = vrot.lane.b32.xlu1 %v507_v60, %s751_s18 }
  0xd8   : > { %519 = vrot.lane.b32.xlu2 %v517_v61, %s751_s18 }
  0xdf   : > { %539 = vrot.lane.b32.xlu1 %v537_v63, %s751_s18 }
  0xe0   : > { %546 = vperm.xlu2 %730, %v543_v0  }
  0xe1   : > { %v223_v30 = vpop.permute.xlu2 %222 }
  0xe2   : > { %v225_v4 = vadd.f32 %v223_v30, %v849_v9 }
  0xeb   : > { %v284_v2 = vpop.permute.xlu0 %283 }
  0xf2   : > { %v233_v1 = vpop.permute.xlu2 %232 }
  0xf3   : > { %v235_v5 = vadd.f32 %v233_v1, %v225_v4 }
  0xf9   : > { %v243_v3 = vpop.permute.xlu1 %242 }
  0xfa   : > { %v253_v34 = vpop.permute.xlu2 %252  ;;  %v245_v7 = vadd.f32 %v243_v3, %v235_v5 }
  0xfc   : > { %v255_v8 = vadd.f32 %v253_v34, %v245_v7 }
 0x101   : > { %v305_v54 = vpop.permute.xlu0 %304  ;;  %v264_v6 = vpop.permute.xlu1 %263 }
 0x102   : > { %v266_v10 = vadd.f32 %v264_v6, %v255_v8  ;;  %v294_v48 = vpop.permute.xlu2 %293 }
 0x109   : > { %v274_v11 = vpop.permute.xlu1 %273 }
 0x10a   : > { %v276_v12 = vadd.f32 %v274_v11, %v266_v10  ;;  %v335_v13 = vpop.permute.xlu0 %334  ;;  %v325_v19 = vpop.permute.xlu2 %324 }
 0x10c   : > { %v286_v14 = vadd.f32 %v284_v2, %v276_v12 }
 0x10e   : > { %v296_v15 = vadd.f32 %v294_v48, %v286_v14 }
 0x110   : > { %v307_v16 = vadd.f32 %v305_v54, %v296_v15 }
 0x111   : > { %v315_v17 = vpop.permute.xlu1 %314 }
 0x112   : > { %v317_v18 = vadd.f32 %v315_v17, %v307_v16  ;;  %v376_v20 = vpop.permute.xlu0 %375  ;;  %v346_v23 = vpop.permute.xlu2 %345 }
 0x114   : > { %v327_v21 = vadd.f32 %v325_v19, %v317_v18 }
 0x116   : > { %v337_v22 = vadd.f32 %v335_v13, %v327_v21 }
 0x118   : > { %v348_v25 = vadd.f32 %v346_v23, %v337_v22 }
 0x119   : > { %v356_v9 = vpop.permute.xlu1 %355 }
 0x11a   : > { %v407_v24 = vpop.permute.xlu0 %406  ;;  %v358_v27 = vadd.f32 %v356_v9, %v348_v25  ;;  %v397_v35 = vpop.permute.xlu2 %396 }
 0x121   : > { %v366_v26 = vpop.permute.xlu1 %365 }
 0x122   : > { %v368_v28 = vadd.f32 %v366_v26, %v358_v27  ;;  %v428_v29 = vpop.permute.xlu0 %427  ;;  %v458_v42 = vpop.permute.xlu2 %457 }
 0x124   : > { %v378_v32 = vadd.f32 %v376_v20, %v368_v28 }
 0x129   : > { %v387_v33 = vpop.permute.xlu1 %386 }
 0x12a   : > { %v389_v31 = vadd.f32 %v387_v33, %v378_v32  ;;  %v438_v38 = vpop.permute.xlu0 %437  ;;  %v489_v49 = vpop.permute.xlu2 %488 }
 0x12c   : > { %v399_v36 = vadd.f32 %v397_v35, %v389_v31 }
 0x12e   : > { %v409_v37 = vadd.f32 %v407_v24, %v399_v36 }
 0x131   : > { %v417_v39 = vpop.permute.xlu1 %416 }
 0x132   : > { %v419_v40 = vadd.f32 %v417_v39, %v409_v37  ;;  %v469_v46 = vpop.permute.xlu0 %468  ;;  %v520_v57 = vpop.permute.xlu2 %519 }
 0x134   : > { %v430_v41 = vadd.f32 %v428_v29, %v419_v40 }
 0x136   : > { %v440_v43 = vadd.f32 %v438_v38, %v430_v41 }
 0x139   : > { %v448_v44 = vpop.permute.xlu1 %447 }
 0x13a   : > { %v450_v45 = vadd.f32 %v448_v44, %v440_v43  ;;  %v499_v53 = vpop.permute.xlu0 %498  ;;  %v547_v0 = vpop.permute.xlu2 %546 }
 0x13c   : > { %v460_v47 = vadd.f32 %v458_v42, %v450_v45 }
 0x13e   : > { %v471_v50 = vadd.f32 %v469_v46, %v460_v47 }
 0x141   : > { %v479_v51 = vpop.permute.xlu1 %478 }
 0x142   : > { %v481_v52 = vadd.f32 %v479_v51, %v471_v50  ;;  %v530_v61 = vpop.permute.xlu0 %529 }
 0x144   : > { %v491_v55 = vadd.f32 %v489_v49, %v481_v52 }
 0x146   : > { %v501_v56 = vadd.f32 %v499_v53, %v491_v55 }
 0x149   : > { %v510_v58 = vpop.permute.xlu1 %509 }
 0x14a   : > { %v512_v59 = vadd.f32 %v510_v58, %v501_v56 }
 0x14c   : > { %v522_v60 = vadd.f32 %v520_v57, %v512_v59 }
 0x14e   : > { %v532_v62 = vadd.f32 %v530_v61, %v522_v60 }
 0x151   : > { %v540_v63 = vpop.permute.xlu1 %539 }
 0x152   : > { %v542_v30 = vadd.f32 %v540_v63, %v532_v62 }
 0x154   : > { %v549_v1 = vadd.f32 %v547_v0, %v542_v30 }
 0x156   : > { %551 = vst.msk [vmem:[%s165_s24] sm:$0x1f] %vm550_vm0, %v549_v1 }
 0x157 PF: > { %s13_s12 = sadd.s32 1, %s738_s12  }
 0x158   : > { %p10_p4 = scmp.ge.s32.totalorder %s13_s12, 4  }
 0x15a   :  { %12 = sbr.rel (!%p10_p4) target bundleno = 1 (0x1), region = 62 }

</bundles_post_ra>
